<compile_context>
chip_gen: v7x
topology: tpu7x:2x2x1
jax: 0.10.0
libtpu: 0.0.40
codegen_flags: <defaults>
</compile_context>

<pallas_src>
import functools

import jax
import jax.numpy as jnp
from jax.experimental import pallas as pl
from jax.experimental.pallas import tpu as pltpu


def mono_attn_kernel(x_ref, w_ref, v_ref, o_ref, num_acc, den_acc, *,
                     t_tile, t_valid, mxu_dtype, approx_recip):
    # x_ref: (Bb, F, Tt) native layout, T on the lane axis
    # w_ref: (H, F); v_ref: (H, 1)
    # o_ref: (Bb, F); num_acc: (Bb, F) f32; den_acc: (Bb, 1) f32
    tj = pl.program_id(1)

    @pl.when(tj == 0)
    def _init():
        num_acc[...] = jnp.zeros_like(num_acc)
        den_acc[...] = jnp.zeros_like(den_acc)

    x = x_ref[...]                                        # (Bb, F, Tt), loaded once
    block_b = x.shape[0]
    w = w_ref[...].astype(mxu_dtype)                      # (H, F), resident operand

    # Hidden projection: block_b clean 2-D MXU matmuls with N = Tt (>=128 when
    # streaming) -- no (Bb,H,F) broadcast of W.  The stack is along the untiled
    # major axis, i.e. free slab placement.
    h = jnp.stack(
        [jnp.maximum(
            jax.lax.dot(w, x[b].astype(mxu_dtype),
                        preferred_element_type=jnp.float32), 0.0)
         for b in range(block_b)],
        axis=0)                                           # (Bb, H, Tt) f32

    # e[b, t] = sum_h v[h] * h[b, h, t]: VPU multiply + cross-vreg adds
    # (avoids an N=1 MXU matmul; only the final 8-sublane fold touches the XLU).
    v_col = v_ref[...].astype(jnp.float32)                # (H, 1)
    e = jnp.sum(h * v_col[None, :, :], axis=1)            # (Bb, Tt)

    # Max-free online softmax: tanh clamps e to [-1, 1] so exp never overflows.
    p = jnp.exp(jnp.tanh(e))                              # (Bb, Tt)

    if t_valid is not None:
        # Zero the padded time steps so they don't pollute the denominator
        # (exp(tanh(0)) == 1); the padded x columns are already zero.
        t_idx = tj * t_tile + jax.lax.broadcasted_iota(jnp.int32, p.shape, 1)
        p = jnp.where(t_idx < t_valid, p, 0.0)

    den_acc[...] += jnp.sum(p, axis=-1, keepdims=True)    # (Bb, 1)
    # Weighted time sum reuses the already-loaded x tile (VPU mul + lane
    # reduce); only a per-tile product is ever materialized.
    num_acc[...] += jnp.sum(p[:, None, :] * x.astype(jnp.float32), axis=-1)  # (Bb, F)

    @pl.when(tj == pl.num_programs(1) - 1)
    def _finalize():
        den = den_acc[...]
        inv = pl.reciprocal(den, approx=True) if approx_recip else 1.0 / den
        o_ref[...] = (num_acc[...] * inv).astype(o_ref.dtype)


def _vmem_capacity_bytes():
    try:
        return int(pltpu.get_tpu_info().vmem_capacity_bytes)
    except Exception:
        return 64 << 20            # conservative: v7x per-TensorCore VMEM


def _pick_t_tile(T):
    # Lane-dense tiles: take T whole when small (block dim == array dim is
    # layout-legal); otherwise stream 128-aligned chunks, minimizing padding.
    if T <= 512:
        return T
    best, best_pad = 512, ((T + 511) // 512) * 512
    for cand in (384, 256, 128):
        pad = ((T + cand - 1) // cand) * cand
        if pad < best_pad:
            best, best_pad = cand, pad
    return best


def _pick_block_b(B, F_in, H, t_tile, itemsize, vmem_cap):
    def footprint(bb):
        return (2 * bb * F_in * t_tile * itemsize     # pipelined x tiles (double buffered)
                + bb * H * t_tile * 4                 # hidden projection (f32)
                + bb * F_in * t_tile * 4              # weighted-sum product (f32)
                + 4 * bb * (F_in + 1))                # accumulators + out
    cap = int(vmem_cap * 0.45)                        # headroom for params / spills
    cands = [c for c in (64, 32, 16, 8) if B % c == 0]
    if B >= 16:
        # Keep >= 2 batch grid steps when possible so both v7x TCs get work
        # (costs only one extra ~0.35us step on single-TC v5e/v6e).
        cands = [c for c in cands if B // c >= 2] or cands
    if not cands:
        return B
    for c in cands:
        if footprint(c) <= cap:
            return c
    return cands[-1]


def mono_head_attention(x, W, v, *, block_b=None, t_tile=None,
                        use_bf16_mxu=None, approx_recip=True):
    """x: (B, F, T); W: (H, F); v: (H, 1). Returns (B, F).

    Matches MonoHeadAttention.forward (hidden_layer=True, bias=False).
    """
    B, F_in, T = x.shape
    H = W.shape[0]

    if use_bf16_mxu is None:
        use_bf16_mxu = (x.dtype == jnp.bfloat16)
    mxu_dtype = jnp.bfloat16 if use_bf16_mxu else jnp.float32

    vmem_cap = _vmem_capacity_bytes()
    if t_tile is None:
        t_tile = _pick_t_tile(T)
    t_grid = pl.cdiv(T, t_tile)
    T_pad = t_grid * t_tile
    if T_pad != T:
        x = jnp.pad(x, ((0, 0), (0, 0), (0, T_pad - T)))  # lane-dense tiles

    itemsize = jnp.dtype(x.dtype).itemsize
    if block_b is None:
        block_b = _pick_block_b(B, F_in, H, t_tile, itemsize, vmem_cap)
    assert B % block_b == 0, (B, block_b)
    grid = (B // block_b, t_grid)                          # reduction (T) axis last

    kernel = functools.partial(
        mono_attn_kernel, t_tile=t_tile,
        t_valid=(T if T_pad != T else None),
        mxu_dtype=mxu_dtype, approx_recip=approx_recip)

    # Scoped-VMEM request sized to the chosen blocks (defaults are only
    # 16/32 MiB and would cap tiles long before physical VMEM).
    need = (2 * block_b * F_in * t_tile * itemsize         # x (double buffered)
            + 2 * block_b * F_in * itemsize                # out (double buffered)
            + (H * F_in + H) * 4                           # W, v
            + block_b * (F_in + 1) * 4                     # accumulators
            + block_b * (H + F_in) * t_tile * 4)           # h + weighted product
    vmem_limit = int(min(max(2 * need, 32 << 20), int(vmem_cap * 0.9)))

    return pl.pallas_call(
        kernel,
        out_shape=jax.ShapeDtypeStruct((B, F_in), x.dtype),
        grid=grid,
        in_specs=[
            pl.BlockSpec((block_b, F_in, t_tile), lambda b, t: (b, 0, t)),
            pl.BlockSpec((H, F_in), lambda b, t: (0, 0)),
            pl.BlockSpec((H, 1), lambda b, t: (0, 0)),
        ],
        out_specs=pl.BlockSpec((block_b, F_in), lambda b, t: (b, 0)),
        scratch_shapes=[
            pltpu.VMEM((block_b, F_in), jnp.float32),      # num accumulator
            pltpu.VMEM((block_b, 1), jnp.float32),         # den accumulator
        ],
        compiler_params=pltpu.CompilerParams(
            dimension_semantics=("parallel", "arbitrary"),
            vmem_limit_bytes=vmem_limit),
    )(x, W, v)


def reference(x, W, v):
    """Pure-JAX reference mirroring the torch forward."""
    x_btf = jnp.transpose(x, (0, 2, 1))                    # (B, T, F)
    h = jax.nn.relu(jnp.einsum('btf,hf->bth', x_btf, W))   # (B, T, H)
    e = jnp.einsum('bth,ho->bt', h, v)                     # (B, T)
    alpha = jax.nn.softmax(jnp.tanh(e), axis=1)            # (B, T)
    return jnp.einsum('bft,bt->bf', x, alpha)              # (B, F)


if __name__ == "__main__":
    # Small shapes consistent with the module: x is (B, F, T) with
    # input_size == F, hidden_size == H, hidden_layer=True, bias=False.
    B, F_in, T, H = 2, 8, 16, 32

    key = jax.random.PRNGKey(0)
    kx, kw, kv, kx2 = jax.random.split(key, 4)

    x = jax.random.normal(kx, (B, F_in, T), dtype=jnp.float32)
    # Deterministic kaiming_normal_-style init (fan_in = dim 1 of the 2D param).
    W = jax.random.normal(kw, (H, F_in), dtype=jnp.float32) * jnp.sqrt(2.0 / F_in)
    v = jax.random.normal(kv, (H, 1), dtype=jnp.float32) * jnp.sqrt(2.0 / 1.0)

    # Default (perf) path: approx EUP reciprocal in the softmax finalize.
    out = jax.block_until_ready(mono_head_attention(x, W, v))
    ref = reference(x, W, v)
    assert out.shape == (B, F_in), out.shape
    assert jnp.allclose(out, ref, atol=5e-3, rtol=5e-3), jnp.max(jnp.abs(out - ref))

    # Exact-reciprocal path verifies full f32 fidelity.
    out_exact = jax.block_until_ready(
        mono_head_attention(x, W, v, approx_recip=False))
    assert jnp.allclose(out_exact, ref, atol=1e-5, rtol=1e-5), \
        jnp.max(jnp.abs(out_exact - ref))

    # Exercise the T-streaming + padded-tail masking path (T > 512).
    T2 = 600
    x2 = jax.random.normal(kx2, (B, F_in, T2), dtype=jnp.float32)
    out2 = jax.block_until_ready(
        mono_head_attention(x2, W, v, approx_recip=False))
    ref2 = reference(x2, W, v)
    assert jnp.allclose(out2, ref2, atol=1e-4, rtol=1e-4), \
        jnp.max(jnp.abs(out2 - ref2))

    print("KERNEL_OK")
</pallas_src>

<mosaic_0001>
module attributes {stable_mosaic.version = 11 : i64} {
  func.func @mono_attn_kernel(%arg0: i32, %arg1: i32, %arg2: memref<2x8x16xf32, #tpu.memory_space<vmem>>, %arg3: memref<32x8xf32, #tpu.memory_space<vmem>>, %arg4: memref<32x1xf32, #tpu.memory_space<vmem>>, %arg5: memref<2x8xf32, #tpu.memory_space<vmem>>, %arg6: memref<2x8xf32, #tpu.memory_space<vmem>>, %arg7: memref<2x1xf32, #tpu.memory_space<vmem>>) attributes {dimension_semantics = [#tpu.dimension_semantics<parallel>, #tpu.dimension_semantics<arbitrary>], iteration_bounds = array<i64: 1, 1>, scalar_prefetch = 0 : i64, scratch_operands = 2 : i64, tpu.core_type = #tpu.core_type<tc>, window_params = [{transform_indices = @transform_0, window_bounds = array<i64: 2, 8, 16>}, {pipeline_mode = #tpu.pipeline_mode<synchronous>, transform_indices = @transform_1, window_bounds = array<i64: 32, 8>}, {pipeline_mode = #tpu.pipeline_mode<synchronous>, transform_indices = @transform_2, window_bounds = array<i64: 32, 1>}, {transform_indices = @transform_3, window_bounds = array<i64: 2, 8>}]} {
    %c0_i32 = arith.constant 0 : i32
    %0 = arith.cmpi eq, %arg1, %c0_i32 : i32
    %1 = arith.extui %0 : i1 to i32
    %c0_i32_0 = arith.constant 0 : i32
    %2 = arith.cmpi ne, %1, %c0_i32_0 : i32
    scf.if %2 {
      %cst_23 = arith.constant 0.000000e+00 : f32
      %40 = vector.broadcast %cst_23 : f32 to vector<2x8xf32>
      %c0_24 = arith.constant 0 : index
      %c0_25 = arith.constant 0 : index
      %41 = vector.load %arg6[%c0_24, %c0_25] : memref<2x8xf32, #tpu.memory_space<vmem>>, vector<2x8xf32>
      tpu.vector_store %arg6[%c0_24, %c0_25], %40 {strides = array<i32>} : memref<2x8xf32, #tpu.memory_space<vmem>>, vector<2x8xf32>,
      %cst_26 = arith.constant 0.000000e+00 : f32
      %42 = vector.broadcast %cst_26 : f32 to vector<2x1xf32>
      %c0_27 = arith.constant 0 : index
      %c0_28 = arith.constant 0 : index
      %43 = vector.load %arg7[%c0_27, %c0_28] : memref<2x1xf32, #tpu.memory_space<vmem>>, vector<2x1xf32>
      tpu.vector_store %arg7[%c0_27, %c0_28], %42 {strides = array<i32>} : memref<2x1xf32, #tpu.memory_space<vmem>>, vector<2x1xf32>,
    } else {
    }
    %c0 = arith.constant 0 : index
    %c0_1 = arith.constant 0 : index
    %c0_2 = arith.constant 0 : index
    %3 = vector.load %arg2[%c0, %c0_1, %c0_2] : memref<2x8x16xf32, #tpu.memory_space<vmem>>, vector<2x8x16xf32>
    %c0_3 = arith.constant 0 : index
    %c0_4 = arith.constant 0 : index
    %4 = vector.load %arg3[%c0_3, %c0_4] : memref<32x8xf32, #tpu.memory_space<vmem>>, vector<32x8xf32>
    %5 = vector.extract_strided_slice %3 {offsets = [0, 0, 0], sizes = [1, 8, 16], strides = [1, 1, 1]} : vector<2x8x16xf32> to vector<1x8x16xf32>
    %6 = vector.shape_cast %5 : vector<1x8x16xf32> to vector<8x16xf32>
    %cst = arith.constant dense<0.000000e+00> : vector<32x16xf32>
    %7 = tpu.matmul %4, %6, %cst {dimension_numbers = #tpu.dot_dimension_numbers<[1], [0], [0], [1], [0, 0, 1, 1], [], []>} : vector<32x8xf32>, vector<8x16xf32>, vector<32x16xf32> -> vector<32x16xf32>
    %cst_5 = arith.constant 0.000000e+00 : f32
    %8 = vector.broadcast %cst_5 : f32 to vector<32x16xf32>
    %9 = arith.maximumf %7, %8 : vector<32x16xf32>
    %10 = vector.extract_strided_slice %3 {offsets = [1, 0, 0], sizes = [1, 8, 16], strides = [1, 1, 1]} : vector<2x8x16xf32> to vector<1x8x16xf32>
    %11 = vector.shape_cast %10 : vector<1x8x16xf32> to vector<8x16xf32>
    %cst_6 = arith.constant dense<0.000000e+00> : vector<32x16xf32>
    %12 = tpu.matmul %4, %11, %cst_6 {dimension_numbers = #tpu.dot_dimension_numbers<[1], [0], [0], [1], [0, 0, 1, 1], [], []>} : vector<32x8xf32>, vector<8x16xf32>, vector<32x16xf32> -> vector<32x16xf32>
    %cst_7 = arith.constant 0.000000e+00 : f32
    %13 = vector.broadcast %cst_7 : f32 to vector<32x16xf32>
    %14 = arith.maximumf %12, %13 : vector<32x16xf32>
    %15 = vector.shape_cast %9 : vector<32x16xf32> to vector<1x32x16xf32>
    %16 = vector.shape_cast %14 : vector<32x16xf32> to vector<1x32x16xf32>
    %17 = tpu.concatenate %15, %16 in 0 : vector<1x32x16xf32>, vector<1x32x16xf32> -> vector<2x32x16xf32>
    %c0_8 = arith.constant 0 : index
    %c0_9 = arith.constant 0 : index
    %18 = vector.load %arg4[%c0_8, %c0_9] : memref<32x1xf32, #tpu.memory_space<vmem>>, vector<32x1xf32>
    %19 = vector.shape_cast %18 : vector<32x1xf32> to vector<1x32x1xf32>
    %20 = vector.broadcast %19 : vector<1x32x1xf32> to vector<2x32x16xf32>
    %21 = arith.mulf %17, %20 : vector<2x32x16xf32>
    %cst_10 = arith.constant dense<0.000000e+00> : vector<2x16xf32>
    %22 = vector.multi_reduction <add>, %21, %cst_10 [1] : vector<2x32x16xf32> to vector<2x16xf32>
    %23 = math.tanh %22 : vector<2x16xf32>
    %24 = math.exp %23 : vector<2x16xf32>
    %c0_11 = arith.constant 0 : index
    %c0_12 = arith.constant 0 : index
    %25 = vector.load %arg7[%c0_11, %c0_12] : memref<2x1xf32, #tpu.memory_space<vmem>>, vector<2x1xf32>
    %cst_13 = arith.constant dense<0.000000e+00> : vector<2xf32>
    %26 = vector.multi_reduction <add>, %24, %cst_13 [1] : vector<2x16xf32> to vector<2xf32>
    %27 = vector.shape_cast %26 : vector<2xf32> to vector<2x1xf32>
    %28 = arith.addf %25, %27 : vector<2x1xf32>
    %c0_14 = arith.constant 0 : index
    %c0_15 = arith.constant 0 : index
    %29 = vector.load %arg7[%c0_14, %c0_15] : memref<2x1xf32, #tpu.memory_space<vmem>>, vector<2x1xf32>
    tpu.vector_store %arg7[%c0_14, %c0_15], %28 {strides = array<i32>} : memref<2x1xf32, #tpu.memory_space<vmem>>, vector<2x1xf32>,
    %c0_16 = arith.constant 0 : index
    %c0_17 = arith.constant 0 : index
    %30 = vector.load %arg6[%c0_16, %c0_17] : memref<2x8xf32, #tpu.memory_space<vmem>>, vector<2x8xf32>
    %31 = vector.shape_cast %24 : vector<2x16xf32> to vector<2x1x16xf32>
    %32 = vector.broadcast %31 : vector<2x1x16xf32> to vector<2x8x16xf32>
    %33 = arith.mulf %32, %3 : vector<2x8x16xf32>
    %cst_18 = arith.constant dense<0.000000e+00> : vector<2x8xf32>
    %34 = vector.multi_reduction <add>, %33, %cst_18 [2] : vector<2x8x16xf32> to vector<2x8xf32>
    %35 = arith.addf %30, %34 : vector<2x8xf32>
    %c0_19 = arith.constant 0 : index
    %c0_20 = arith.constant 0 : index
    %36 = vector.load %arg6[%c0_19, %c0_20] : memref<2x8xf32, #tpu.memory_space<vmem>>, vector<2x8xf32>
    tpu.vector_store %arg6[%c0_19, %c0_20], %35 {strides = array<i32>} : memref<2x8xf32, #tpu.memory_space<vmem>>, vector<2x8xf32>,
    %c0_i32_21 = arith.constant 0 : i32
    %37 = arith.cmpi eq, %arg1, %c0_i32_21 : i32
    %38 = arith.extui %37 : i1 to i32
    %c0_i32_22 = arith.constant 0 : i32
    %39 = arith.cmpi ne, %38, %c0_i32_22 : i32
    scf.if %39 {
      %c0_23 = arith.constant 0 : index
      %c0_24 = arith.constant 0 : index
      %40 = vector.load %arg7[%c0_23, %c0_24] : memref<2x1xf32, #tpu.memory_space<vmem>>, vector<2x1xf32>
      %41 = tpu.reciprocal %40 {approx = true} : vector<2x1xf32> -> vector<2x1xf32>
      %c0_25 = arith.constant 0 : index
      %c0_26 = arith.constant 0 : index
      %42 = vector.load %arg6[%c0_25, %c0_26] : memref<2x8xf32, #tpu.memory_space<vmem>>, vector<2x8xf32>
      %43 = vector.broadcast %41 : vector<2x1xf32> to vector<2x8xf32>
      %44 = arith.mulf %42, %43 : vector<2x8xf32>
      %c0_27 = arith.constant 0 : index
      %c0_28 = arith.constant 0 : index
      %45 = vector.load %arg5[%c0_27, %c0_28] : memref<2x8xf32, #tpu.memory_space<vmem>>, vector<2x8xf32>
      tpu.vector_store %arg5[%c0_27, %c0_28], %44 {strides = array<i32>} : memref<2x8xf32, #tpu.memory_space<vmem>>, vector<2x8xf32>,
    } else {
    }
    return
  }
  func.func @transform_0(%arg0: i32, %arg1: i32) -> (i32, i32, i32) {
    %c0_i32 = arith.constant 0 : i32
    %c0_i32_0 = arith.constant 0 : i32
    return %arg0, %c0_i32, %arg1 : i32, i32, i32
  }
  func.func @transform_1(%arg0: i32, %arg1: i32) -> (i32, i32) {
    %c0_i32 = arith.constant 0 : i32
    %c0_i32_0 = arith.constant 0 : i32
    %c0_i32_1 = arith.constant 0 : i32
    return %c0_i32, %c0_i32_0 : i32, i32
  }
  func.func @transform_2(%arg0: i32, %arg1: i32) -> (i32, i32) {
    %c0_i32 = arith.constant 0 : i32
    %c0_i32_0 = arith.constant 0 : i32
    %c0_i32_1 = arith.constant 0 : i32
    return %c0_i32, %c0_i32_0 : i32, i32
  }
  func.func @transform_3(%arg0: i32, %arg1: i32) -> (i32, i32) {
    %c0_i32 = arith.constant 0 : i32
    %c0_i32_0 = arith.constant 0 : i32
    return %arg0, %c0_i32 : i32, i32
  }
}

</mosaic_0001>

<bundles_post_ra>
// kernel: tpu_custom_call.1
= control target key start
LH: loop header
LB: loop body
LE: loop exit
PB: predicated region body
PF: predicated region fallthrough
CT: control target
= control target key end

     0   :  { %vm29_vm0 = vcmask 64512   ;;  %s522_s0 = inlined_call_operand.vmem [shape: f32[2,8,16], index: 0, kind: input, shape index: {}]   ;;  %s523_s1 = inlined_call_operand.vmem [shape: f32[32,8], index: 1, kind: input, shape index: {}]   ;;  %s524_s2 = inlined_call_operand.vmem [shape: f32[32,1], index: 2, kind: input, shape index: {}]   ;;  %s525_s3 = inlined_call_operand.hbm [shape: f32[2,8], index: 3, kind: output, shape index: {}]  }
   0x1   :  { %v450_v0 = vld [vmem:[%s522_s0] sm:$0xff]  ;;  %v455_v1 = vld [vmem:[%s522_s0 + $0x8] sm:$0xff]  ;;  %v27_v4 = vld [vmem:[%s523_s1 + $0x10] sm:$0xff] }
   0x2   :  { %v25_v2 = vld [vmem:[%s523_s1] sm:$0xff]  ;;  %369 = vmatprep.subr.mxu0 %v450_v0  ;;  %377 = vmatprep.subr.mxu1 %v455_v1  ;;  %v26_v3 = vld [vmem:[%s523_s1 + $0x8] sm:$0xff] }
   0x3   :  { %370 = vmatpush3.msra.mxu0 %v450_v0  ;;  %371 = vmatprep.mubr.msk.f32.mxu0 %vm29_vm0, %v25_v2 }
   0x4   :  { %378 = vmatpush3.msra.mxu1 %v455_v1  ;;  %379 = vmatprep.mubr.msk.f32.mxu1 %vm29_vm0, %v25_v2 }
   0x5   :  { %8 = vsyncpa [#allocation5], 0  ;;  %372 = vmatmul.mubr.msk.f32.vlgmr.msra.gmra.mrb[0].mxu0 %vm29_vm0, %v26_v3  ;;  %380 = vmatmul.mubr.msk.f32.vlgmr.msra.gmra.mrb[0].mxu1 %vm29_vm0, %v26_v3  ;;  %v220_v5 = vld [vmem:[%s524_s2] sm:$0xff]  ;;  %v222_v6 = vld [vmem:[%s524_s2 + $0x10] sm:$0xff]  ;;  %v424_v8 = vmov 0   ;;  %vm252_vm1 = vcmask 130048  }
   0x6   :  { %374 = vmatprep.mubr.msk.f32.mxu0 %vm29_vm0, %v27_v4  ;;  %382 = vmatprep.mubr.msk.f32.mxu1 %vm29_vm0, %v27_v4  ;;  %v28_v7 = vld [vmem:[%s523_s1 + $0x18] sm:$0xff]  ;;  %v221_v9 = vld [vmem:[%s524_s2 + $0x8] sm:$0xff]  ;;  %vm288_vm2 = vcmask 1041409   ;;  %vm291_vm3 = vcmask 123904   ;;  %vm21_vm4 = vcmask 1024   ;;  %vm19_vm5 = vcmask 58368  }
   0x7   :  { %388 = vset.pattern.permute.xlu0 %v424_v8  ;;  %389 = vset.pattern.permute.xlu1 %v424_v8  ;;  %v223_v10 = vld [vmem:[%s524_s2 + $0x18] sm:$0xff]  ;;  %s426_s1 = smov [#allocation4]  }
   0x8   :  { %226 = vperm.xlu0 %388, %v220_v5   ;;  %236 = vperm.xlu1 %389, %v222_v6   ;;  %s343_s2 = sshll.u32 %s426_s1, 4  ;;  %s344_s2 = int_to_ptr.vmem [resolvable:$true] %s343_s2 }
   0x9   :  { %375 = vmatmul.mubr.msk.f32.gmra.mrb[2].mxu0 %vm29_vm0, %v28_v7  ;;  %383 = vmatmul.mubr.msk.f32.gmra.mrb[2].mxu1 %vm29_vm0, %v28_v7  ;;  %s400_s4 = scalar_lea.vmem %s344_s2, 32  ;;  %p405_p1 = scmp.lt.s32.totalorder %s344_s2, %s344_s2 }
   0xa   :  { %p401_p0 = scmp.ne.s32.totalorder %s344_s2, %s400_s4  ;;  %p406_p2 = scmp.lt.s32.totalorder %s400_s4, %s400_s4 }
   0xc   :  { %231 = vperm.xlu0 %388, %v221_v9   ;;  %241 = vperm.xlu1 %389, %v223_v10   ;;  %p407_p3 = por %p406_p2, %p405_p1 }
   0xe   :  { %p408_p4 = pnand %p407_p3, %p401_p0 }
  0x87   :  { %v227_v11 = vpop.permute.xlu0 %226  ;;  %v237_v12 = vpop.permute.xlu1 %236 }
  0x8b   :  { %v232_v13 = vpop.permute.xlu0 %231  ;;  %v242_v24 = vpop.permute.xlu1 %241 }
  0xd8   :  { %v373_v14 = vpop.f32.mrb[0].mxu0  ;;  %v381_v15 = vpop.f32.mrb[0].mxu1 }
  0xd9   :  { %v128_v16 = vmax.f32 %v373_v14, 0.0  ;;  %v217_v17 = vmax.f32 %v381_v15, 0.0  ;;  %v108_v18 = vpop.f32.mrb[1].mxu0  ;;  %v197_v19 = vpop.f32.mrb[1].mxu1  ;;  %v425_v15 = vmov 0.0  }
  0xda   :  { %v127_v20 = vmax.f32 %v108_v18, 0.0  ;;  %v216_v21 = vmax.f32 %v197_v19, 0.0  ;;  %22 = vst.msk [vmem:[#allocation3] sm:$0x3] %vm21_vm4, %v425_v15 }
  0xdb   :  { %v245_v22 = vmul.f32 %v232_v13, %v128_v16  ;;  %v249_v23 = vmul.f32 %v232_v13, %v217_v17  ;;  %20 = vst.msk [vmem:[#allocation2] sm:$0x3] %vm19_vm5, %v425_v15  ;;  %v309_v16 = vlaneseq }
  0xdc   :  { %v244_v25 = vmul.f32 %v227_v11, %v127_v20  ;;  %v248_v26 = vmul.f32 %v227_v11, %v216_v21  ;;  %v376_v27 = vpop.f32.mrb[2].mxu0  ;;  %v384_v28 = vpop.f32.mrb[2].mxu1 }
  0xdd   :  { %v254_v29 = vsel %vm252_vm1, %v245_v22, 0.0  ;;  %v267_v30 = vsel %vm252_vm1, %v249_v23, 0.0  ;;  %v130_v31 = vmax.f32 %v376_v27, 0.0  ;;  %v219_v32 = vmax.f32 %v384_v28, 0.0  ;;  %v118_v33 = vpop.f32.mrb[3].mxu0  ;;  %v207_v34 = vpop.f32.mrb[3].mxu1 }
  0xde   :  { %v253_v35 = vsel %vm252_vm1, %v244_v25, 0.0  ;;  %v266_v36 = vsel %vm252_vm1, %v248_v26, 0.0  ;;  %v129_v37 = vmax.f32 %v118_v33, 0.0  ;;  %v218_v38 = vmax.f32 %v207_v34, 0.0 }
  0xdf   :  { %v255_v39 = vadd.f32 %v254_v29, %v253_v35  ;;  %v268_v40 = vadd.f32 %v267_v30, %v266_v36  ;;  %v247_v41 = vmul.f32 %v242_v24, %v130_v31  ;;  %v251_v42 = vmul.f32 %v242_v24, %v219_v32 }
  0xe0   :  { %v246_v43 = vmul.f32 %v237_v12, %v129_v37  ;;  %v250_v44 = vmul.f32 %v237_v12, %v218_v38  ;;  %v312_v17 = vshrl.u32 %v309_v16, 7 }
  0xe1   :  { %v258_v49 = vsel %vm252_vm1, %v247_v41, 0.0  ;;  %v271_v50 = vsel %vm252_vm1, %v251_v42, 0.0  ;;  %v285_v18 = vld [vmem:[#allocation3] sm:$0x3] }
  0xe2   :  { %v256_v45 = vsel %vm252_vm1, %v246_v43, 0.0  ;;  %v269_v46 = vsel %vm252_vm1, %v250_v44, 0.0  ;;  %v298_v25 = vld [vmem:[#allocation2] sm:$0x3] }
  0xe3   :  { %v257_v47 = vadd.f32 %v256_v45, %v255_v39  ;;  %v270_v48 = vadd.f32 %v269_v46, %v268_v40 }
  0xe5   :  { %v259_v51 = vadd.f32 %v258_v49, %v257_v47  ;;  %v272_v52 = vadd.f32 %v271_v50, %v270_v48 }
  0xe7   :  { %v260_v53 = vrot.slane %v259_v51, 4  ;;  %v273_v54 = vrot.slane %v272_v52, 4 }
  0xe9   :  { %v261_v55 = vadd.f32 %v260_v53, %v259_v51  ;;  %v274_v56 = vadd.f32 %v273_v54, %v272_v52 }
  0xeb   :  { %v262_v57 = vrot.slane %v261_v55, 2  ;;  %v275_v58 = vrot.slane %v274_v56, 2 }
  0xed   :  { %v263_v59 = vadd.f32 %v262_v57, %v261_v55  ;;  %v276_v60 = vadd.f32 %v275_v58, %v274_v56 }
  0xef   :  { %v264_v61 = vrot.slane %v263_v59, 1  ;;  %v277_v62 = vrot.slane %v276_v60, 1 }
  0xf1   :  { %v265_v63 = vadd.f32 %v264_v61, %v263_v59  ;;  %v278_v2 = vadd.f32 %v277_v62, %v276_v60 }
  0xf3   :  { %390 = vtanh.f32 %v265_v63 }
  0xf4   :  { %392 = vtanh.f32 %v278_v2 }
  0xfd   :  { %v391_v3 = vpop.eup %390 }
  0xfe   :  { %v393_v4 = vpop.eup %392  ;;  %v281_v5 = vmul.f32 1.442695, %v391_v3 }
  0xff   :  { %v283_v6 = vmul.f32 1.442695, %v393_v4 }
 0x100   :  { %394 = vpow2.f32 %v281_v5 }
 0x101   :  { %396 = vpow2.f32 %v283_v6 }
 0x10a   :  { %v395_v7 = vpop.eup %394 }
 0x10b   :  { %v397_v8 = vpop.eup %396  ;;  %v299_v9 = vmul.f32 %v395_v7, %v450_v0  ;;  %v310_v0 = vand.u32 127, %v309_v16 }
 0x10c   :  { %v289_v10 = vsel %vm288_vm2, %v397_v8, %v395_v7  ;;  %v300_v13 = vmul.f32 %v397_v8, %v455_v1 }
 0x10d   :  { %v292_v11 = vsel %vm291_vm3, %v289_v10, 0.0  ;;  %v301_v12 = vsel %vm252_vm1, %v299_v9, 0.0  ;;  %v313_v21 = vsub.s32 %v310_v0, %v312_v17 }
 0x10e   :  { %293 = vadd.xlane.f32.xlu0 %v292_v11  ;;  %302 = vadd.xlane.f32.xlu1 %v301_v12  ;;  %v304_v14 = vsel %vm252_vm1, %v300_v13, 0.0 }
 0x112   :  { %305 = vadd.xlane.f32.xlu0 %v304_v14 }
 0x19b   :  { %v294_v19 = vpop.xlane.xlu0 %293  ;;  %v303_v22 = vpop.xlane.xlu1 %302 }
 0x19c   :  { %v295_v20 = vadd.f32 %v294_v19, %v285_v18  ;;  %v314_v23 = vrot.slane %v303_v22, %v313_v21 }
 0x19e   :  { %297 = vst.msk [vmem:[#allocation3] sm:$0x3] %vm21_vm4, %v295_v20 }
 0x19f   :  { %v306_v1 = vpop.xlane.xlu0 %305 }
 0x1a0   :  { %v318_v24 = vrot.slane %v306_v1, %v313_v21 }
 0x1a2   :  { %v319_v26 = vsel %vm288_vm2, %v318_v24, %v314_v23 }
 0x1a3   :  { %v321_v27 = vadd.f32 %v319_v26, %v298_v25 }
 0x1a5   :  { %v327_v28 = vld [vmem:[#allocation3] sm:$0x3]  ;;  %323 = vst.msk [vmem:[#allocation2] sm:$0x3] %vm19_vm5, %v321_v27 }
 0x1a6   :  { %398 = vrcp.f32 %v327_v28 }
 0x1ac   :  { %v329_v31 = vld [vmem:[#allocation2] sm:$0x3] }
 0x1b0   :  { %v399_v29 = vpop.eup %398 }
 0x1b1   :  { %332 = vperm.xlu0 %388, %v399_v29  }
 0x230   :  { %v333_v30 = vpop.permute.xlu0 %332 }
 0x231   :  { %v335_v32 = vmul.f32 %v333_v30, %v329_v31 }
 0x233   :  { %336 = vst.msk [vmem:[#allocation4] sm:$0x3] %vm19_vm5, %v335_v32 }
 0x234   :  { %411 = shalt.err (!%p408_p4)
}
 0x235   :  { %s412_s7 = scalar_lea.hbm %s525_s3, 32 }
 0x236   :  { %p413_p5 = scmp.ne.s32.totalorder %s525_s3, %s412_s7  ;;  %p416_p6 = scmp.lt.u32.totalorder %s412_s7, %s525_s3 }
 0x238   :  { %p418_p7 = pnand %p416_p6, %p413_p5 }
 0x23a   :  { %421 = shalt.err (!%p418_p7)
}
 0x23b   :  { %346 = dma.vmem_to_hbm [thread:$0]  %s344_s2, 32, %s525_s3, [#allocation5]  }
 0x23c   :  { %422 = dma.done.wait [#allocation5], 32  }
 0x23d   :  { %423 = vsyncadd [#allocation5], 4294967264 }
 0x23e   :  { %350 = vsyncpa [#allocation5], 1 }

</bundles_post_ra>
